<compile_context>
chip_gen: v7x
topology: tpu7x:2x2x1
jax: 0.10.0
libtpu: 0.0.40
codegen_flags: <defaults>
</compile_context>

<pallas_src>
import functools

import jax
import jax.numpy as jnp
from jax import lax
from jax.experimental import pallas as pl
from jax.experimental.pallas import tpu as pltpu


_SQRT_2_OVER_PI = 0.7978845608028654


def _gelu_tanh(x):
    # tanh-approx GELU: tanh goes to the EUP (separate VLIW slot); only a few
    # VALU muls remain -> keeps the kernel MXU-bound on v6e/v7x.
    x3 = x * x * x
    return 0.5 * x * (1.0 + jnp.tanh(_SQRT_2_OVER_PI * (x + 0.044715 * x3)))


def _gelu_exact(x):
    # nn.GELU() default (exact erf) -- used only by the host-side reference.
    return 0.5 * x * (1.0 + lax.erf(x * (1.0 / jnp.sqrt(2.0).astype(x.dtype))))


def _round_up(a, m):
    return ((a + m - 1) // m) * m


def _device_kind():
    try:
        return jax.devices()[0].device_kind.lower()
    except Exception:
        return ""


def _vmem_capacity_bytes():
    try:
        cap = getattr(pltpu.get_tpu_info(), "vmem_capacity_bytes", None)
        if cap:
            return int(cap)
    except Exception:
        pass
    kind = _device_kind()
    if not kind:
        return 64 * 1024 * 1024       # unknown -> conservative
    if "7" in kind:                   # v7x: 64 MiB per TensorCore
        return 64 * 1024 * 1024
    return 128 * 1024 * 1024          # v5e / v6e (and similar)


def _feature_multiple():
    kind = _device_kind()
    # v6e / v7x MXUs are 256 lanes wide; older generations are 128x128.
    if "v6" in kind or "7" in kind:
        return 256
    return 128


def _num_tensorcores():
    kind = _device_kind()
    return 2 if "7" in kind else 1


def _pad_feature(n, mult):
    p = _round_up(n, 128)
    # Avoid a half-filled final 256-lane MXU pass on v6e/v7x (only worth it
    # once the dim is at least one full 256 group).
    if mult == 256 and p >= 256 and p % 256:
        p = _round_up(n, 256)
    return p


# --------------------------------------------------------------------------- #
# Kernels
# --------------------------------------------------------------------------- #

def _mlp_kernel_resident(x_ref, w1_ref, b1_ref, w2_ref, b2_ref, o_ref):
    # x_ref:  (tm, dim_p)      input tile (f32 or bf16; cast to compute dtype)
    # w1_ref: (dim_p, hid_p)   fc1 weight (bf16, single-buffered, grid-invariant)
    # b1_ref: (1, hid_p)       fc1 bias (f32)
    # w2_ref: (hid_p, out_p)   fc2 weight (bf16, single-buffered)
    # b2_ref: (1, out_p)       fc2 bias (f32)
    # o_ref:  (tm, out_p)
    x = x_ref[...].astype(w1_ref.dtype)
    h = jnp.dot(x, w1_ref[...], preferred_element_type=jnp.float32)
    h = _gelu_tanh(h + b1_ref[...])
    # TODO(synk): training-mode dropout (RNG + mask) omitted; identity as in eval().
    y = jnp.dot(h.astype(w2_ref.dtype), w2_ref[...],
                preferred_element_type=jnp.float32)
    o_ref[...] = (y + b2_ref[...]).astype(o_ref.dtype)


def _mlp_kernel_hidden_tiled(x_ref, w1_ref, b1_ref, w2_ref, b2_ref, o_ref,
                             acc_ref):
    # Hidden dimension is the innermost ("arbitrary") grid axis; fc2 output is
    # accumulated in an f32 scratch and finalized on the last hidden step.
    h_step = pl.program_id(1)

    @pl.when(h_step == 0)
    def _():
        acc_ref[...] = jnp.zeros_like(acc_ref)

    x = x_ref[...].astype(w1_ref.dtype)
    h = jnp.dot(x, w1_ref[...], preferred_element_type=jnp.float32)
    h = _gelu_tanh(h + b1_ref[...])
    acc_ref[...] += jnp.dot(h.astype(w2_ref.dtype), w2_ref[...],
                            preferred_element_type=jnp.float32)

    @pl.when(h_step == pl.num_programs(1) - 1)
    def _():
        o_ref[...] = (acc_ref[...] + b2_ref[...]).astype(o_ref.dtype)


# --------------------------------------------------------------------------- #
# Host-side wrappers
# --------------------------------------------------------------------------- #

def prepare_mlp_params(w1, b1, w2, b2, compute_dtype=jnp.bfloat16):
    """Pad/cast the Linear parameters once (hoisted out of the per-call path)."""
    dim, hidden = w1.shape
    out_dim = w2.shape[1]
    mult = _feature_multiple()
    dim_p = _round_up(dim, 128)
    hid_p = _pad_feature(hidden, mult)
    out_p = _pad_feature(out_dim, mult)
    cd = jnp.dtype(compute_dtype)
    w1p = jnp.pad(w1.astype(cd), ((0, dim_p - dim), (0, hid_p - hidden)))
    w2p = jnp.pad(w2.astype(cd), ((0, hid_p - hidden), (0, out_p - out_dim)))
    b1p = jnp.pad(b1.astype(jnp.float32), (0, hid_p - hidden)).reshape(1, hid_p)
    b2p = jnp.pad(b2.astype(jnp.float32), (0, out_p - out_dim)).reshape(1, out_p)
    return (w1p, b1p, w2p, b2p, int(out_dim))


@functools.partial(
    jax.jit,
    static_argnames=("out_dim", "tm", "hidden_tile", "force_hidden_tiling"))
def _mlp_apply(x, w1p, b1p, w2p, b2p, *, out_dim, tm, hidden_tile,
               force_hidden_tiling):
    B, N, dim = x.shape
    dim_p, hid_p = w1p.shape
    out_p = w2p.shape[1]
    cd = w1p.dtype
    cdsz = jnp.dtype(cd).itemsize
    out_dtype = x.dtype
    o_isz = jnp.dtype(out_dtype).itemsize
    M = B * N

    # Native sublane tile: 16 rows for bf16, 8 for f32.
    sub = 16 if cdsz <= 2 else 8
    tm_req = max(sub, min(tm, _round_up(M, sub)))

    vmem_cap = _vmem_capacity_bytes()
    vmem_budget = vmem_cap - max(8 * 1024 * 1024, vmem_cap // 8)  # headroom

    def resident_need(tm_e, x_isz):
        return (2 * tm_e * dim_p * x_isz              # x tile (double-buffered)
                + 2 * tm_e * out_p * o_isz            # out tile (double-buffered)
                + dim_p * hid_p * cdsz                # w1 (single buffer)
                + hid_p * out_p * cdsz                # w2 (single buffer)
                + (hid_p + out_p) * 4                 # biases (f32)
                + tm_e * hid_p * (4 + cdsz)           # f32 h + bf16 h
                + tm_e * out_p * 4)                   # f32 y before cast

    # Pick the largest row tile whose weights-resident footprint fits VMEM.
    tm_eff = None
    for cand in (tm_req, 256, 128, 64, 32, sub):
        cand = max(sub, min(cand, tm_req))
        if resident_need(cand, 4) <= vmem_budget:     # 4B = worst-case f32 x
            tm_eff = cand
            break
    use_tiled = bool(force_hidden_tiling) or (tm_eff is None)
    if tm_eff is None:
        tm_eff = max(sub, min(tm_req, 256))

    M_pad = _round_up(M, tm_eff)
    # On 2-TensorCore parts, make sure the "parallel" row axis has >= 2 steps.
    if _num_tensorcores() >= 2 and M_pad // tm_eff < 2 and M > sub:
        tm_eff = _round_up(-(-M // 2), sub)
        M_pad = _round_up(M, tm_eff)

    x2d = x.reshape(M, dim)
    needs_pad = (M_pad != M) or (dim_p != dim)
    if needs_pad:
        # Wrapper pass over activations is unavoidable here; fold the compute
        # dtype cast into it so the padded tiles DMA at 2 bytes/elem.
        x2d = jnp.pad(x2d.astype(cd), ((0, M_pad - M), (0, dim_p - dim)))
        x_isz = cdsz
    else:
        # No padding needed: stream x at native dtype, cast inside the kernel
        # (saves a full HBM read+write pass in the wrapper).
        x_isz = jnp.dtype(x2d.dtype).itemsize

    if not use_tiled:
        vmem_need = resident_need(tm_eff, x_isz)
        vmem_limit = int(min(max(int(1.4 * vmem_need), 8 * 1024 * 1024),
                             vmem_budget))
        out2d = pl.pallas_call(
            _mlp_kernel_resident,
            out_shape=jax.ShapeDtypeStruct((M_pad, out_p), out_dtype),
            grid_spec=pltpu.PrefetchScalarGridSpec(
                num_scalar_prefetch=0,
                grid=(M_pad // tm_eff,),
                in_specs=[
                    pl.BlockSpec((tm_eff, dim_p), lambda i: (i, 0)),
                    # Grid-invariant weights/biases: single-buffered.
                    pl.BlockSpec((dim_p, hid_p), lambda i: (0, 0),
                                 pipeline_mode=pl.Buffered(1)),
                    pl.BlockSpec((1, hid_p), lambda i: (0, 0),
                                 pipeline_mode=pl.Buffered(1)),
                    pl.BlockSpec((hid_p, out_p), lambda i: (0, 0),
                                 pipeline_mode=pl.Buffered(1)),
                    pl.BlockSpec((1, out_p), lambda i: (0, 0),
                                 pipeline_mode=pl.Buffered(1)),
                ],
                out_specs=pl.BlockSpec((tm_eff, out_p), lambda i: (i, 0)),
            ),
            compiler_params=pltpu.CompilerParams(
                dimension_semantics=("parallel",),
                vmem_limit_bytes=vmem_limit,
            ),
        )(x2d, w1p, b1p, w2p, b2p)
    else:
        # Hidden-tiled fallback: weights streamed in (dim_p, th)/(th, out_p)
        # blocks; output accumulated in f32 scratch.
        th = min(int(hidden_tile), hid_p)
        th = max(128, (th // 128) * 128)
        while hid_p % th:
            th -= 128
        tiled_need = (2 * tm_eff * dim_p * x_isz
                      + 2 * (dim_p * th + th * out_p) * cdsz
                      + 2 * th * 4 + out_p * 4
                      + 2 * tm_eff * out_p * o_isz
                      + tm_eff * out_p * 4            # acc scratch
                      + tm_eff * th * (4 + cdsz)      # f32 h + bf16 h
                      + tm_eff * out_p * 4)
        vmem_limit = int(min(max(int(1.4 * tiled_need), 8 * 1024 * 1024),
                             vmem_budget))
        out2d = pl.pallas_call(
            _mlp_kernel_hidden_tiled,
            out_shape=jax.ShapeDtypeStruct((M_pad, out_p), out_dtype),
            grid_spec=pltpu.PrefetchScalarGridSpec(
                num_scalar_prefetch=0,
                grid=(M_pad // tm_eff, hid_p // th),
                in_specs=[
                    pl.BlockSpec((tm_eff, dim_p), lambda i, h: (i, 0)),
                    pl.BlockSpec((dim_p, th), lambda i, h: (0, h)),
                    pl.BlockSpec((1, th), lambda i, h: (0, h)),
                    pl.BlockSpec((th, out_p), lambda i, h: (h, 0)),
                    pl.BlockSpec((1, out_p), lambda i, h: (0, 0),
                                 pipeline_mode=pl.Buffered(1)),
                ],
                out_specs=pl.BlockSpec((tm_eff, out_p), lambda i, h: (i, 0)),
                scratch_shapes=[pltpu.VMEM((tm_eff, out_p), jnp.float32)],
            ),
            compiler_params=pltpu.CompilerParams(
                dimension_semantics=("parallel", "arbitrary"),
                vmem_limit_bytes=vmem_limit,
            ),
        )(x2d, w1p, b1p, w2p, b2p)

    if (M_pad != M) or (out_p != out_dim):
        out2d = out2d[:M, :out_dim]
    return out2d.reshape(B, N, out_dim)


def mlp_pallas(x, prepared, *, tm=512, hidden_tile=512,
               force_hidden_tiling=False):
    """x: (B, N, dim) -> (B, N, out_dim). Fused fc1 + GELU + fc2 on TPU."""
    w1p, b1p, w2p, b2p, out_dim = prepared
    return _mlp_apply(x, w1p, b1p, w2p, b2p, out_dim=out_dim, tm=tm,
                      hidden_tile=hidden_tile,
                      force_hidden_tiling=force_hidden_tiling)


def mlp_forward(x, w1, b1, w2, b2, **kwargs):
    """One-shot convenience wrapper (prepares params every call)."""
    return mlp_pallas(x, prepare_mlp_params(w1, b1, w2, b2), **kwargs)


# --------------------------------------------------------------------------- #
# Self-test
# --------------------------------------------------------------------------- #

if __name__ == "__main__":
    key = jax.random.PRNGKey(0)

    def make_params(k, dim, hidden, out_dim):
        kw1, kb1, kw2, kb2 = jax.random.split(k, 4)
        w1 = jax.random.normal(kw1, (dim, hidden), jnp.float32) * (1.0 / dim) ** 0.5
        b1 = jax.random.normal(kb1, (hidden,), jnp.float32) * 0.01
        w2 = jax.random.normal(kw2, (hidden, out_dim), jnp.float32) * (1.0 / hidden) ** 0.5
        b2 = jax.random.normal(kb2, (out_dim,), jnp.float32) * 0.01
        return w1, b1, w2, b2

    def reference(x, w1, b1, w2, b2):
        h = jnp.dot(x, w1) + b1
        h = _gelu_exact(h)          # nn.GELU() default (exact erf)
        return jnp.dot(h, w2) + b2  # dropout is identity in eval mode

    def check(name, x, params, **kwargs):
        w1, b1, w2, b2 = params
        prepared = prepare_mlp_params(w1, b1, w2, b2)
        y = jax.block_until_ready(mlp_pallas(x, prepared, **kwargs))
        y_ref = reference(x, w1, b1, w2, b2)
        assert y.shape == y_ref.shape, (name, y.shape, y_ref.shape)
        # bf16 matmul operands + tanh-approx GELU vs f32 exact-erf reference.
        assert jnp.allclose(y, y_ref, atol=7e-2, rtol=7e-2), f"{name}: mismatch"

    k0, k1, k2, k3, k4, k5 = jax.random.split(key, 6)

    # 1) Small ViT-block shapes; padded feature dims; weights-resident path.
    B, N, dim, hidden, out_dim = 2, 8, 32, 64, 32
    x = jax.random.normal(k0, (B, N, dim), jnp.float32)
    check("resident", x, make_params(k1, dim, hidden, out_dim))

    # 2) Lane-aligned shapes -> no wrapper pad/cast pass over x (cast in-kernel).
    B, N, dim, hidden, out_dim = 2, 16, 128, 256, 128
    x = jax.random.normal(k2, (B, N, dim), jnp.float32)
    check("aligned", x, make_params(k3, dim, hidden, out_dim))

    # 3) Hidden-tiled fallback path (used automatically when the weights do not
    #    fit the VMEM budget; forced here at small size to exercise it).
    B, N, dim, hidden, out_dim = 2, 16, 32, 320, 96
    x = jax.random.normal(k4, (B, N, dim), jnp.float32)
    check("hidden_tiled", x, make_params(k5, dim, hidden, out_dim),
          hidden_tile=128, force_hidden_tiling=True)

    print("KERNEL_OK")
</pallas_src>

<mosaic_0001>
module attributes {stable_mosaic.version = 11 : i64} {
  func.func @_mlp_kernel_resident(%arg0: i32, %arg1: memref<16x128xbf16, #tpu.memory_space<vmem>>, %arg2: memref<128x128xbf16, #tpu.memory_space<vmem>>, %arg3: memref<1x128xf32, #tpu.memory_space<vmem>>, %arg4: memref<128x128xbf16, #tpu.memory_space<vmem>>, %arg5: memref<1x128xf32, #tpu.memory_space<vmem>>, %arg6: memref<16x128xf32, #tpu.memory_space<vmem>>) attributes {dimension_semantics = [#tpu.dimension_semantics<parallel>], iteration_bounds = array<i64: 1>, scalar_prefetch = 0 : i64, scratch_operands = 0 : i64, tpu.core_type = #tpu.core_type<tc>, window_params = [{transform_indices = @transform_0, window_bounds = array<i64: 16, 128>}, {pipeline_mode = #tpu.pipeline_mode<synchronous>, transform_indices = @transform_1, window_bounds = array<i64: 128, 128>}, {pipeline_mode = #tpu.pipeline_mode<synchronous>, transform_indices = @transform_2, window_bounds = array<i64: 1, 128>}, {pipeline_mode = #tpu.pipeline_mode<synchronous>, transform_indices = @transform_3, window_bounds = array<i64: 128, 128>}, {pipeline_mode = #tpu.pipeline_mode<synchronous>, transform_indices = @transform_4, window_bounds = array<i64: 1, 128>}, {transform_indices = @transform_5, window_bounds = array<i64: 16, 128>}]} {
    %c0 = arith.constant 0 : index
    %c0_0 = arith.constant 0 : index
    %0 = vector.load %arg1[%c0, %c0_0] : memref<16x128xbf16, #tpu.memory_space<vmem>>, vector<16x128xbf16>
    %c0_1 = arith.constant 0 : index
    %c0_2 = arith.constant 0 : index
    %1 = vector.load %arg2[%c0_1, %c0_2] : memref<128x128xbf16, #tpu.memory_space<vmem>>, vector<128x128xbf16>
    %cst = arith.constant dense<0.000000e+00> : vector<16x128xf32>
    %2 = tpu.matmul %0, %1, %cst {dimension_numbers = #tpu.dot_dimension_numbers<[1], [0], [0], [1], [0, 0, 1, 1], [], []>} : vector<16x128xbf16>, vector<128x128xbf16>, vector<16x128xf32> -> vector<16x128xf32>
    %c0_3 = arith.constant 0 : index
    %c0_4 = arith.constant 0 : index
    %3 = vector.load %arg3[%c0_3, %c0_4] : memref<1x128xf32, #tpu.memory_space<vmem>>, vector<1x128xf32>
    %4 = vector.broadcast %3 : vector<1x128xf32> to vector<16x128xf32>
    %5 = arith.addf %2, %4 : vector<16x128xf32>
    %6 = arith.mulf %5, %5 : vector<16x128xf32>
    %7 = arith.mulf %6, %5 : vector<16x128xf32>
    %cst_5 = arith.constant 5.000000e-01 : f32
    %8 = vector.broadcast %cst_5 : f32 to vector<16x128xf32>
    %9 = arith.mulf %8, %5 : vector<16x128xf32>
    %cst_6 = arith.constant 4.471500e-02 : f32
    %10 = vector.broadcast %cst_6 : f32 to vector<16x128xf32>
    %11 = arith.mulf %10, %7 : vector<16x128xf32>
    %12 = arith.addf %5, %11 : vector<16x128xf32>
    %cst_7 = arith.constant 0.797884583 : f32
    %13 = vector.broadcast %cst_7 : f32 to vector<16x128xf32>
    %14 = arith.mulf %13, %12 : vector<16x128xf32>
    %15 = math.tanh %14 : vector<16x128xf32>
    %cst_8 = arith.constant 1.000000e+00 : f32
    %16 = vector.broadcast %cst_8 : f32 to vector<16x128xf32>
    %17 = arith.addf %16, %15 : vector<16x128xf32>
    %18 = arith.mulf %9, %17 : vector<16x128xf32>
    %19 = arith.truncf %18 : vector<16x128xf32> to vector<16x128xbf16>
    %c0_9 = arith.constant 0 : index
    %c0_10 = arith.constant 0 : index
    %20 = vector.load %arg4[%c0_9, %c0_10] : memref<128x128xbf16, #tpu.memory_space<vmem>>, vector<128x128xbf16>
    %cst_11 = arith.constant dense<0.000000e+00> : vector<16x128xf32>
    %21 = tpu.matmul %19, %20, %cst_11 {dimension_numbers = #tpu.dot_dimension_numbers<[1], [0], [0], [1], [0, 0, 1, 1], [], []>} : vector<16x128xbf16>, vector<128x128xbf16>, vector<16x128xf32> -> vector<16x128xf32>
    %c0_12 = arith.constant 0 : index
    %c0_13 = arith.constant 0 : index
    %22 = vector.load %arg5[%c0_12, %c0_13] : memref<1x128xf32, #tpu.memory_space<vmem>>, vector<1x128xf32>
    %23 = vector.broadcast %22 : vector<1x128xf32> to vector<16x128xf32>
    %24 = arith.addf %21, %23 : vector<16x128xf32>
    %c0_14 = arith.constant 0 : index
    %c0_15 = arith.constant 0 : index
    %25 = vector.load %arg6[%c0_14, %c0_15] : memref<16x128xf32, #tpu.memory_space<vmem>>, vector<16x128xf32>
    tpu.vector_store %arg6[%c0_14, %c0_15], %24 {strides = array<i32>} : memref<16x128xf32, #tpu.memory_space<vmem>>, vector<16x128xf32>,
    return
  }
  func.func @transform_0(%arg0: i32) -> (i32, i32) {
    %c0_i32 = arith.constant 0 : i32
    %c0_i32_0 = arith.constant 0 : i32
    return %arg0, %c0_i32 : i32, i32
  }
  func.func @transform_1(%arg0: i32) -> (i32, i32) {
    %c0_i32 = arith.constant 0 : i32
    %c0_i32_0 = arith.constant 0 : i32
    %c0_i32_1 = arith.constant 0 : i32
    return %c0_i32, %c0_i32_0 : i32, i32
  }
  func.func @transform_2(%arg0: i32) -> (i32, i32) {
    %c0_i32 = arith.constant 0 : i32
    %c0_i32_0 = arith.constant 0 : i32
    %c0_i32_1 = arith.constant 0 : i32
    return %c0_i32, %c0_i32_0 : i32, i32
  }
  func.func @transform_3(%arg0: i32) -> (i32, i32) {
    %c0_i32 = arith.constant 0 : i32
    %c0_i32_0 = arith.constant 0 : i32
    %c0_i32_1 = arith.constant 0 : i32
    return %c0_i32, %c0_i32_0 : i32, i32
  }
  func.func @transform_4(%arg0: i32) -> (i32, i32) {
    %c0_i32 = arith.constant 0 : i32
    %c0_i32_0 = arith.constant 0 : i32
    %c0_i32_1 = arith.constant 0 : i32
    return %c0_i32, %c0_i32_0 : i32, i32
  }
  func.func @transform_5(%arg0: i32) -> (i32, i32) {
    %c0_i32 = arith.constant 0 : i32
    %c0_i32_0 = arith.constant 0 : i32
    return %arg0, %c0_i32 : i32, i32
  }
}

</mosaic_0001>

<bundles_post_ra>
// kernel: _mlp_apply.1
= control target key start
LH: loop header
LB: loop body
LE: loop exit
PB: predicated region body
PF: predicated region fallthrough
CT: control target
= control target key end

     0   :  { %10 = vsyncpa [#allocation3], 0  ;;  %s535_s0 = inlined_call_operand.vmem [shape: bf16[16,128], index: 0, kind: input, shape index: {}]   ;;  %s536_s1 = inlined_call_operand.hbm [shape: bf16[128,128], index: 1, kind: input, shape index: {}]   ;;  %s537_s2 = inlined_call_operand.vmem [shape: f32[1,128], index: 2, kind: input, shape index: {}]   ;;  %s538_s3 = inlined_call_operand.hbm [shape: bf16[128,128], index: 3, kind: input, shape index: {}]   ;;  %s539_s4 = inlined_call_operand.vmem [shape: f32[1,128], index: 4, kind: input, shape index: {}]   ;;  %s540_s5 = inlined_call_operand.vmem [shape: f32[16,128], index: 5, kind: output, shape index: {}]  }
   0x1   :  { %11 = vsyncpa [#allocation5], 0  ;;  %s460_s18 = smov [#allocation2]   ;;  %s412_s22 = scalar_lea.hbm %s536_s1, 1024 }
   0x2   :  { %s19_s19 = sshll.u32 %s460_s18, 4  ;;  %p413_p0 = scmp.ne.s32.totalorder %s536_s1, %s412_s22  ;;  %s20_s19 = int_to_ptr.vmem [resolvable:$true] %s19_s19 }
   0x3   :  { %p416_p1 = scmp.lt.u32.totalorder %s412_s22, %s536_s1 }
   0x5   :  { %p418_p2 = pnand %p416_p1, %p413_p0 }
   0x7   :  { %421 = shalt.err (!%p418_p2)
}
   0x8   :  { %s422_s27 = scalar_lea.vmem %s20_s19, 1024  ;;  %p427_p4 = scmp.lt.s32.totalorder %s20_s19, %s20_s19 }
   0x9   :  { %p423_p3 = scmp.ne.s32.totalorder %s20_s19, %s422_s27  ;;  %p428_p5 = scmp.lt.s32.totalorder %s422_s27, %s422_s27 }
   0xb   :  { %p429_p6 = por %p428_p5, %p427_p4 }
   0xd   :  { %p430_p7 = pnand %p429_p6, %p423_p3 }
   0xf   :  { %433 = shalt.err (!%p430_p7)
}
  0x10   :  { %s461_s28 = smov 64   ;;  %s462_s29 = smov 4  }
  0x11   :  { %25 = dma.hbm_to_vmem [thread:$0]  %s536_s1, 1024, %s20_s19, [#allocation3], %s461_s28, %s461_s28, %s462_s29  }
  0x12   :  { %s463_s7 = smov [#allocation4]   ;;  %s434_s11 = scalar_lea.hbm %s538_s3, 1024 }
  0x13   :  { %s33_s8 = sshll.u32 %s463_s7, 4  ;;  %p435_p8 = scmp.ne.s32.totalorder %s538_s3, %s434_s11  ;;  %s34_s8 = int_to_ptr.vmem [resolvable:$true] %s33_s8 }
  0x14   :  { %p438_p9 = scmp.lt.u32.totalorder %s434_s11, %s538_s3 }
  0x16   :  { %p440_p10 = pnand %p438_p9, %p435_p8 }
  0x18   :  { %443 = shalt.err (!%p440_p10)
}
  0x19   :  { %s444_s16 = scalar_lea.vmem %s34_s8, 1024  ;;  %p449_p12 = scmp.lt.s32.totalorder %s34_s8, %s34_s8 }
  0x1a   :  { %p445_p11 = scmp.ne.s32.totalorder %s34_s8, %s444_s16  ;;  %p450_p13 = scmp.lt.s32.totalorder %s444_s16, %s444_s16 }
  0x1c   :  { %p451_p0 = por %p450_p13, %p449_p12 }
  0x1e   :  { %p452_p1 = pnand %p451_p0, %p445_p11 }
  0x20   :  { %455 = shalt.err (!%p452_p1)
}
  0x21   :  { %39 = dma.hbm_to_vmem [thread:$0]  %s538_s3, 1024, %s34_s8, [#allocation5], %s461_s28, %s461_s28, %s462_s29  }
  0x22   :  { %456 = dma.done.wait [#allocation3], 1024  }
  0x23   :  { %457 = vsyncadd [#allocation3], 4294966272 }
  0x24   :  { %458 = dma.done.wait [#allocation5], 1024  }
  0x25   :  { %459 = vsyncadd [#allocation5], 4294966272  ;;  %v464_v0 = vmov 0.0   ;;  %vm465_vm0 = vmmov 0   ;;  %v391_v1 = vld [vmem:[#allocation2] sm:$0xff]   ;;  %v392_v2 = vld [vmem:[#allocation2 + $0x8] sm:$0xff]  }
  0x26   :  { %345 = vmatprep.subr.bf16.mxu0 %v464_v0  ;;  %361 = vmatprep.mubr.msk.bf16.mxu0 %vm465_vm0, %v464_v0  ;;  %v393_v3 = vld [vmem:[#allocation2 + $0x10] sm:$0xff]   ;;  %v394_v4 = vld [vmem:[#allocation2 + $0x18] sm:$0xff]   ;;  %v395_v5 = vld [vmem:[#allocation2 + $0x20] sm:$0xff]  }
  0x27   :  { %365 = vmatprep.subr.bf16.mxu1 %v464_v0  ;;  %381 = vmatprep.mubr.msk.bf16.mxu1 %vm465_vm0, %v464_v0  ;;  %v396_v6 = vld [vmem:[#allocation2 + $0x28] sm:$0xff]   ;;  %v397_v7 = vld [vmem:[#allocation2 + $0x30] sm:$0xff]   ;;  %v398_v8 = vld [vmem:[#allocation2 + $0x38] sm:$0xff]  }
  0x28   :  { %346 = vmatpush3.bf16.msra.mxu0 %v391_v1  ;;  %v399_v9 = vld [vmem:[%s535_s0] sm:$0xff]   ;;  %v401_v11 = vld [vmem:[#allocation4 + $0x8] sm:$0xff]   ;;  %v402_v12 = vld [vmem:[#allocation4 + $0x10] sm:$0xff]  }
  0x29   :  { %347 = vmatprep.subr.bf16.mxu0 %v464_v0  ;;  %v400_v10 = vld [vmem:[#allocation4] sm:$0xff]   ;;  %v403_v13 = vld [vmem:[#allocation4 + $0x18] sm:$0xff]   ;;  %v405_v15 = vld [vmem:[#allocation4 + $0x28] sm:$0xff]  }
  0x2a   :  { %366 = vmatpush3.bf16.msra.mxu1 %v400_v10  ;;  %v404_v14 = vld [vmem:[#allocation4 + $0x20] sm:$0xff]   ;;  %v406_v16 = vld [vmem:[#allocation4 + $0x30] sm:$0xff]   ;;  %v407_v17 = vld [vmem:[#allocation4 + $0x38] sm:$0xff]  }
  0x2b   :  { %367 = vmatprep.subr.bf16.mxu1 %v464_v0  ;;  %v308_v18 = vld [vmem:[%s537_s2] ss:$0 sm:$0xff] }
  0x2c   :  { %348 = vmatpush3.bf16.msra.mxu0 %v392_v2  ;;  %v318_v44 = vld [vmem:[%s539_s4] ss:$0 sm:$0xff] }
  0x2d   :  { %349 = vmatprep.subr.bf16.mxu0 %v464_v0 }
  0x2e   :  { %368 = vmatpush3.bf16.msra.mxu1 %v401_v11 }
  0x2f   :  { %369 = vmatprep.subr.bf16.mxu1 %v464_v0 }
  0x30   :  { %350 = vmatpush3.bf16.msra.mxu0 %v393_v3 }
  0x31   :  { %351 = vmatprep.subr.bf16.mxu0 %v464_v0 }
  0x32   :  { %370 = vmatpush3.bf16.msra.mxu1 %v402_v12 }
  0x33   :  { %371 = vmatprep.subr.bf16.mxu1 %v464_v0 }
  0x34   :  { %352 = vmatpush3.bf16.msra.mxu0 %v394_v4 }
  0x35   :  { %353 = vmatprep.subr.bf16.mxu0 %v464_v0 }
  0x36   :  { %372 = vmatpush3.bf16.msra.mxu1 %v403_v13 }
  0x37   :  { %373 = vmatprep.subr.bf16.mxu1 %v464_v0 }
  0x38   :  { %354 = vmatpush3.bf16.msra.mxu0 %v395_v5 }
  0x39   :  { %355 = vmatprep.subr.bf16.mxu0 %v464_v0 }
  0x3a   :  { %374 = vmatpush3.bf16.msra.mxu1 %v404_v14 }
  0x3b   :  { %375 = vmatprep.subr.bf16.mxu1 %v464_v0 }
  0x3c   :  { %356 = vmatpush3.bf16.msra.mxu0 %v396_v6 }
  0x3d   :  { %357 = vmatprep.subr.bf16.mxu0 %v464_v0 }
  0x3e   :  { %376 = vmatpush3.bf16.msra.mxu1 %v405_v15 }
  0x3f   :  { %377 = vmatprep.subr.bf16.mxu1 %v464_v0 }
  0x40   :  { %358 = vmatpush3.bf16.msra.mxu0 %v397_v7 }
  0x41   :  { %359 = vmatprep.subr.bf16.mxu0 %v464_v0 }
  0x42   :  { %378 = vmatpush3.bf16.msra.mxu1 %v406_v16 }
  0x43   :  { %379 = vmatprep.subr.bf16.mxu1 %v464_v0 }
  0x44   :  { %360 = vmatpush3.bf16.msra.mxu0 %v398_v8 }
  0x46   :  { %380 = vmatpush3.bf16.msra.mxu1 %v407_v17 }
  0x47   :  { %362 = vmatmul.mubr.bf16.vlgmr.msra.gmra.mrb[0].mxu0 %v399_v9 }
 0x11a   :  { %v162_v19 = vpop.f32.mrb[0].mxu0 }
 0x11b   :  { %v163_v20 = vadd.f32 %v308_v18, %v162_v19  ;;  %v363_v21 = vpop.f32.mrb[1].mxu0 }
 0x11c   :  { %v165_v22 = vpop.f32.mrb[2].mxu0 }
 0x11d   :  { %v169_v23 = vmul.f32 %v163_v20, %v163_v20  ;;  %v166_v24 = vadd.f32 %v308_v18, %v165_v22  ;;  %v364_v25 = vpop.f32.mrb[3].mxu0  ;;  %v173_v38 = vmul.f32 0.5, %v163_v20 }
 0x11f   :  { %v171_v26 = vmul.f32 %v169_v23, %v163_v20  ;;  %v170_v27 = vmul.f32 %v166_v24, %v166_v24  ;;  %v174_v39 = vmul.f32 0.5, %v166_v24 }
 0x121   :  { %v175_v28 = vmul.f32 0.044715, %v171_v26  ;;  %v172_v29 = vmul.f32 %v170_v27, %v166_v24 }
 0x123   :  { %v177_v30 = vadd.f32 %v175_v28, %v163_v20  ;;  %v176_v31 = vmul.f32 0.044715, %v172_v29 }
 0x125   :  { %v179_v32 = vmul.f32 0.7978846, %v177_v30  ;;  %v178_v33 = vadd.f32 %v176_v31, %v166_v24 }
 0x127   :  { %408 = vtanh.f32 %v179_v32  ;;  %v180_v34 = vmul.f32 0.7978846, %v178_v33 }
 0x129   :  { %410 = vtanh.f32 %v180_v34 }
 0x131   :  { %v409_v35 = vpop.eup %408 }
 0x132   :  { %v183_v36 = vadd.f32 1.0, %v409_v35 }
 0x133   :  { %v411_v37 = vpop.eup %410 }
 0x134   :  { %v184_v40 = vadd.f32 1.0, %v411_v37  ;;  %v185_v41 = vmul.f32 %v183_v36, %v173_v38 }
 0x136   :  { %v186_v42 = vmul.f32 %v184_v40, %v174_v39 }
 0x138   :  { %v187_v43 = vpack.c.bf16 %v186_v42, %v185_v41 }
 0x13a   :  { %382 = vmatmul.mubr.bf16.vlgmr.msra.gmra.mrb[0].mxu1 %v187_v43 }
 0x20d   :  { %v293_v45 = vpop.f32.mrb[0].mxu1 }
 0x20e   :  { %v294_v46 = vadd.f32 %v318_v44, %v293_v45  ;;  %v383_v47 = vpop.f32.mrb[1].mxu1 }
 0x20f   :  { %v296_v48 = vpop.f32.mrb[2].mxu1 }
 0x210   :  { %300 = vst [vmem:[%s540_s5] sm:$0xff] %v294_v46  ;;  %v297_v49 = vadd.f32 %v318_v44, %v296_v48  ;;  %v384_v50 = vpop.f32.mrb[3].mxu1 }
 0x212   :  { %301 = vst [vmem:[%s540_s5 + $0x8] sm:$0xff] %v297_v49 }
 0x213   :  { %306 = vsyncpa [#allocation3], 1 }
 0x214   :  { %307 = vsyncpa [#allocation5], 1 }

</bundles_post_ra>
